<compile_context>
chip_gen: v6e
topology: v6e:2x2x1
jax: 0.10.0
libtpu: 0.0.40
codegen_flags: <defaults>
</compile_context>

<pallas_src>
import math

import jax
import jax.numpy as jnp
from jax.experimental import pallas as pl
from jax.experimental.pallas import tpu as pltpu


_TARGET_BLOCK_BYTES = 4 * 1024 * 1024   # ~4 MiB per block
_VMEM_LIMIT_BYTES = 32 * 1024 * 1024    # fits v5e/v6e scoped default and v7x VMEM
_PALLAS_MIN_BYTES = 128 * 1024          # below this, plain XLA add wins
_LANE = 128


def _pick_tile(dim, quantum, max_tile):
    """Choose a tile for one axis.  Returns (tile, num_blocks).

    Prefers an exact divisor of `dim` that is a multiple of `quantum` and
    close to `max_tile` (dense edge blocks); otherwise returns a fixed
    quantum-multiple tile with a cdiv grid so Pallas masks the ragged last
    block.  Never returns an over-budget full-extent fallback block.
    """
    if dim <= quantum:
        return dim, 1                      # full-extent block (exempt from (8,128) rule)
    cap = min(max_tile, dim)
    cap -= cap % quantum
    cap = max(cap, quantum)
    if dim % quantum == 0:
        t = cap
        floor = max(quantum, cap // 2)     # only accept divisors close to the cap
        while t >= floor:
            if dim % t == 0:
                return t, dim // t
            t -= quantum
    return cap, pl.cdiv(dim, cap)


def _add_bias_kernel(x_ref, b_ref, o_ref):
    # x_ref: (tr, tw), b_ref: (1, tw) -> broadcast add over rows (vld/vadd/vst).
    o_ref[...] = x_ref[...] + b_ref[...]


def _add_bias_2d_tiled(x, bias_row):
    """x: (R, W), bias_row: (1, W) -> x + bias_row, streamed through VMEM."""
    r, w = x.shape
    itemsize = jnp.dtype(x.dtype).itemsize
    sub_q = max(8, 32 // itemsize)          # dtype-aware sublane quantum

    # Lane tile: sized from the byte budget given the (clamped) row count, so
    # few-row inputs get very wide lane tiles and tall inputs get ~2k lanes.
    rows_for_sizing = min(max(r, sub_q), 512)
    lane_budget = max(_LANE, _TARGET_BLOCK_BYTES // (rows_for_sizing * itemsize))
    tw, n_w = _pick_tile(w, _LANE, lane_budget)

    # Row tile: whatever remains of the byte budget (no artificial row cap).
    row_budget = max(sub_q, _TARGET_BLOCK_BYTES // (tw * itemsize))
    tr, n_r = _pick_tile(r, sub_q, row_budget)

    cost = pl.CostEstimate(
        flops=r * w,
        transcendentals=0,
        bytes_accessed=2 * r * w * itemsize + w * itemsize,
    )

    # Grid ordered (lane-blocks, row-blocks): the bias block index depends only
    # on the outer axis, so its small DMA is not re-issued on every inner step.
    return pl.pallas_call(
        _add_bias_kernel,
        out_shape=jax.ShapeDtypeStruct((r, w), x.dtype),
        grid=(n_w, n_r),
        in_specs=[
            pl.BlockSpec((tr, tw), lambda j, i: (i, j)),
            pl.BlockSpec((1, tw), lambda j, i: (0, j)),
        ],
        out_specs=pl.BlockSpec((tr, tw), lambda j, i: (i, j)),
        cost_estimate=cost,
        compiler_params=pltpu.CompilerParams(
            dimension_semantics=("parallel", "parallel"),
            vmem_limit_bytes=_VMEM_LIMIT_BYTES,
        ),
    )(x, bias_row)


def _add_bias_2d(x, bias_row):
    """x: (N, C), bias_row: (1, C)."""
    n, c = x.shape
    bias_row = bias_row.astype(x.dtype)

    # Lane-density fold: with C < 128 only C/128 of each vreg row would be
    # used and every store would be a masked partial store.  Fold
    # k = 128 // gcd(C, 128) rows into one lane-dense row (width lcm(C, 128))
    # whenever N divides evenly; bias pairing is preserved by tiling it k
    # times along the lane axis.
    if c < _LANE:
        k = _LANE // math.gcd(c, _LANE)
        if k > 1 and n >= k and n % k == 0:
            x_folded = x.reshape(n // k, k * c)
            bias_folded = jnp.tile(bias_row, (1, k))
            out = _add_bias_2d_tiled(x_folded, bias_folded)
            return out.reshape(n, c)
        # TODO(synk): pad N up to a multiple of k for odd batch sizes; the
        # unfolded path below is correct but lane-sparse (masked stores).
    return _add_bias_2d_tiled(x, bias_row)


def _add_bias_4d(x, bias_col):
    """x: (N, C, H, W) NCHW, bias_col: (C, 1).

    Collapsed to a 2D (N, C*H*W) add with a per-channel repeated bias row:
    keeps stores lane-dense/unmasked even when H*W is not a multiple of 128
    and avoids the per-block lane broadcast of a last-dim-1 bias operand.
    """
    n, c, h, w = x.shape
    hw = h * w
    bias_rep = jnp.repeat(bias_col.reshape(c).astype(x.dtype), hw).reshape(1, c * hw)
    out = _add_bias_2d(x.reshape(n, c * hw), bias_rep)
    return out.reshape(n, c, h, w)


class AddBias:
    """JAX/Pallas port of the PyTorch AddBias module (forward only)."""

    def __init__(self, bias):
        bias = jnp.asarray(bias)
        # Mirrors nn.Parameter(bias.unsqueeze(1)): stored as (C, 1).
        self._bias = bias.reshape(-1, 1)
        self._bias_row = self._bias.reshape(1, -1)   # (1, C) for the 2D path

    def __call__(self, x):
        # Tiny inputs: launch + per-grid-step overhead dominates; the plain
        # XLA fused add is faster and exactly equivalent.
        if x.size * jnp.dtype(x.dtype).itemsize < _PALLAS_MIN_BYTES:
            if x.ndim == 2:
                return x + self._bias_row.astype(x.dtype)
            return x + self._bias.reshape(1, -1, 1, 1).astype(x.dtype)
        if x.ndim == 2:
            return _add_bias_2d(x, self._bias_row)
        # Matches the PyTorch else-branch (expects NCHW).
        return _add_bias_4d(x, self._bias)


# ---------------------------------------------------------------------------
# Main
# ---------------------------------------------------------------------------
if __name__ == "__main__":
    key = jax.random.PRNGKey(0)
    keys = jax.random.split(key, 8)

    # --- small shapes from the module spec (fast XLA fallback path) ---
    C = 4
    bias = jax.random.normal(keys[0], (C,), dtype=jnp.float32)
    module = AddBias(bias)

    x2 = jax.random.normal(keys[1], (2, C), dtype=jnp.float32)
    out2 = jax.block_until_ready(module(x2))
    assert out2.shape == x2.shape and out2.dtype == x2.dtype
    assert jnp.allclose(out2, x2 + bias.reshape(1, C), atol=1e-6), "2D small mismatch"

    x4 = jax.random.normal(keys[2], (2, C, 16, 16), dtype=jnp.float32)
    out4 = jax.block_until_ready(module(x4))
    assert out4.shape == x4.shape and out4.dtype == x4.dtype
    assert jnp.allclose(out4, x4 + bias.reshape(1, C, 1, 1), atol=1e-6), "4D small mismatch"

    # --- Pallas paths ---
    # 2D, small C: lane-density fold (k = 32 rows -> one 128-wide row).
    x2f = jax.random.normal(keys[3], (16384, C), dtype=jnp.float32)
    out2f = jax.block_until_ready(module(x2f))
    assert jnp.allclose(out2f, x2f + bias.reshape(1, C), atol=1e-6), "2D folded mismatch"

    # 2D, C not a multiple of 128 and ragged row count: fixed tiles + cdiv grid.
    C2 = 192
    bias2 = jax.random.normal(keys[4], (C2,), dtype=jnp.float32)
    module2 = AddBias(bias2)
    x2r = jax.random.normal(keys[5], (1001, C2), dtype=jnp.float32)
    out2r = jax.block_until_ready(module2(x2r))
    assert jnp.allclose(out2r, x2r + bias2.reshape(1, C2), atol=1e-6), "2D ragged mismatch"

    # 4D collapsed path, H*W a multiple of 128.
    C3 = 32
    bias3 = jax.random.normal(keys[6], (C3,), dtype=jnp.float32)
    module3 = AddBias(bias3)
    x4a = jax.random.normal(keys[7], (8, C3, 32, 32), dtype=jnp.float32)
    out4a = jax.block_until_ready(module3(x4a))
    assert jnp.allclose(out4a, x4a + bias3.reshape(1, C3, 1, 1), atol=1e-6), "4D mismatch"

    # 4D collapsed path, H*W = 7*7 (ragged lane tiling over C*H*W).
    C4 = 64
    kb, kx = jax.random.split(keys[0])
    bias4 = jax.random.normal(kb, (C4,), dtype=jnp.float32)
    module4 = AddBias(bias4)
    x4b = jax.random.normal(kx, (16, C4, 7, 7), dtype=jnp.float32)
    out4b = jax.block_until_ready(module4(x4b))
    assert jnp.allclose(out4b, x4b + bias4.reshape(1, C4, 1, 1), atol=1e-6), "4D 7x7 mismatch"

    # bf16 2D (exercises the dtype-aware sublane quantum = 16).
    xb = jax.random.normal(keys[1], (1024, 256), dtype=jnp.bfloat16)
    biasb = jax.random.normal(keys[2], (256,), dtype=jnp.float32)
    moduleb = AddBias(biasb)
    outb = jax.block_until_ready(moduleb(xb))
    refb = xb + biasb.astype(jnp.bfloat16).reshape(1, 256)
    assert outb.dtype == jnp.bfloat16
    assert jnp.allclose(outb.astype(jnp.float32), refb.astype(jnp.float32),
                        atol=1e-2), "bf16 mismatch"

    print("KERNEL_OK")
</pallas_src>

<mosaic_0001>
module attributes {stable_mosaic.version = 11 : i64} {
  func.func @_add_bias_kernel(%arg0: i32, %arg1: i32, %arg2: memref<512x128xf32, #tpu.memory_space<vmem>>, %arg3: memref<1x128xf32, #tpu.memory_space<vmem>>, %arg4: memref<512x128xf32, #tpu.memory_space<vmem>>) attributes {dimension_semantics = [#tpu.dimension_semantics<parallel>, #tpu.dimension_semantics<parallel>], iteration_bounds = array<i64: 1, 1>, scalar_prefetch = 0 : i64, scratch_operands = 0 : i64, tpu.core_type = #tpu.core_type<tc>, window_params = [{transform_indices = @transform_0, window_bounds = array<i64: 512, 128>}, {transform_indices = @transform_1, window_bounds = array<i64: 1, 128>}, {transform_indices = @transform_2, window_bounds = array<i64: 512, 128>}]} {
    %c0 = arith.constant 0 : index
    %c0_0 = arith.constant 0 : index
    %0 = vector.load %arg2[%c0, %c0_0] : memref<512x128xf32, #tpu.memory_space<vmem>>, vector<512x128xf32>
    %c0_1 = arith.constant 0 : index
    %c0_2 = arith.constant 0 : index
    %1 = vector.load %arg3[%c0_1, %c0_2] : memref<1x128xf32, #tpu.memory_space<vmem>>, vector<1x128xf32>
    %2 = vector.broadcast %1 : vector<1x128xf32> to vector<512x128xf32>
    %3 = arith.addf %0, %2 : vector<512x128xf32>
    %c0_3 = arith.constant 0 : index
    %c0_4 = arith.constant 0 : index
    %4 = vector.load %arg4[%c0_3, %c0_4] : memref<512x128xf32, #tpu.memory_space<vmem>>, vector<512x128xf32>
    tpu.vector_store %arg4[%c0_3, %c0_4], %3 {strides = array<i32>} : memref<512x128xf32, #tpu.memory_space<vmem>>, vector<512x128xf32>,
    return
  }
  func.func @transform_0(%arg0: i32, %arg1: i32) -> (i32, i32) {
    %c0_i32 = arith.constant 0 : i32
    return %arg1, %arg0 : i32, i32
  }
  func.func @transform_1(%arg0: i32, %arg1: i32) -> (i32, i32) {
    %c0_i32 = arith.constant 0 : i32
    %c0_i32_0 = arith.constant 0 : i32
    return %c0_i32, %arg0 : i32, i32
  }
  func.func @transform_2(%arg0: i32, %arg1: i32) -> (i32, i32) {
    %c0_i32 = arith.constant 0 : i32
    return %arg1, %arg0 : i32, i32
  }
}

</mosaic_0001>

<bundles_post_ra>
// kernel: tpu_custom_call.1
= control target key start
LH: loop header
LB: loop body
LE: loop exit
PB: predicated region body
PF: predicated region fallthrough
CT: control target
= control target key end

     0   :  { %7 = vsyncpa [#allocation3], 0  ;;  %s391_s0 = inlined_call_operand.hbm [shape: f32[512,128], index: 0, kind: input, shape index: {}]   ;;  %s392_s1 = inlined_call_operand.vmem [shape: f32[1,128], index: 1, kind: input, shape index: {}]   ;;  %s393_s2 = inlined_call_operand.hbm [shape: f32[512,128], index: 2, kind: output, shape index: {}]  }
   0x1   :  { %8 = vsyncpa [#allocation4], 0  ;;  %s291_s9 = smov [#allocation2]  }
   0x2   :  { %s14_s10 = sshll.u32 %s291_s9, 4  ;;  %s15_s10 = int_to_ptr.vmem [resolvable:$true] %s14_s10 }
   0x3   :  { %s255_s11 = scalar_lea.vmem %s15_s10, 8192  ;;  %p260_p1 = scmp.lt.s32.totalorder %s15_s10, %s15_s10 }
   0x4   :  { %p256_p0 = scmp.ne.s32.totalorder %s15_s10, %s255_s11  ;;  %p261_p2 = scmp.lt.s32.totalorder %s255_s11, %s255_s11 }
   0x6   :  { %p262_p3 = por %p261_p2, %p260_p1 }
   0x8   :  { %p263_p4 = pnand %p262_p3, %p256_p0 }
   0xa   :  { %266 = shalt.err (!%p263_p4)
}
   0xb   :  { %s292_s12 = smov 128   ;;  %s293_s13 = smov 8  }
   0xc   :  { %20 = dma.hbm_to_vmem [thread:$0]  %s391_s0, 8192, %s15_s10, [#allocation3], %s292_s12, %s292_s12, %s293_s13  }
   0xd   :  { %287 = dma.done.wait [#allocation3], 8192  }
   0xe   :  { %288 = vsyncadd [#allocation3], 4294959104  ;;  %v26_v0 = vld [vmem:[#allocation2] sm:$0xff]  ;;  %v27_v2 = vld [vmem:[#allocation2 + $0x8] sm:$0xff]  ;;  %s294_s0 = smov [#allocation5]  }
   0xf   :  { %v319_v1 = vld [vmem:[%s392_s1] ss:$0 sm:$0xff]  ;;  %v28_v5 = vld [vmem:[#allocation2 + $0x10] sm:$0xff]  ;;  %v29_v6 = vld [vmem:[#allocation2 + $0x18] sm:$0xff]  ;;  %s230_s1 = sshll.u32 %s294_s0, 4  ;;  %s231_s1 = int_to_ptr.vmem [resolvable:$true] %s230_s1 }
  0x10   :  { %v97_v3 = vadd.f32 %v319_v1, %v26_v0  ;;  %v98_v4 = vadd.f32 %v319_v1, %v27_v2  ;;  %v30_v7 = vld [vmem:[#allocation2 + $0x20] sm:$0xff]  ;;  %v99_v8 = vadd.f32 %v319_v1, %v28_v5  ;;  %v100_v9 = vadd.f32 %v319_v1, %v29_v6  ;;  %v31_v11 = vld [vmem:[#allocation2 + $0x28] sm:$0xff]  ;;  %v32_v12 = vld [vmem:[#allocation2 + $0x30] sm:$0xff]  ;;  %s267_s18 = scalar_lea.vmem %s231_s1, 8192  ;;  %p272_p6 = scmp.lt.s32.totalorder %s231_s1, %s231_s1 }
  0x11   :  { %v101_v10 = vadd.f32 %v319_v1, %v30_v7  ;;  %v33_v13 = vld [vmem:[#allocation2 + $0x38] sm:$0xff]  ;;  %v102_v14 = vadd.f32 %v319_v1, %v31_v11  ;;  %v103_v15 = vadd.f32 %v319_v1, %v32_v12  ;;  %v34_v17 = vld [vmem:[#allocation2 + $0x40] sm:$0xff]  ;;  %v35_v18 = vld [vmem:[#allocation2 + $0x48] sm:$0xff]  ;;  %p268_p5 = scmp.ne.s32.totalorder %s231_s1, %s267_s18  ;;  %p273_p7 = scmp.lt.s32.totalorder %s267_s18, %s267_s18 }
  0x12   :  { %161 = vst [vmem:[#allocation5] sm:$0xff] %v97_v3  ;;  %162 = vst [vmem:[#allocation5 + $0x8] sm:$0xff] %v98_v4  ;;  %v104_v16 = vadd.f32 %v319_v1, %v33_v13  ;;  %v36_v19 = vld [vmem:[#allocation2 + $0x50] sm:$0xff]  ;;  %v105_v20 = vadd.f32 %v319_v1, %v34_v17  ;;  %v106_v21 = vadd.f32 %v319_v1, %v35_v18  ;;  %v37_v23 = vld [vmem:[#allocation2 + $0x58] sm:$0xff] }
  0x13   :  { %163 = vst [vmem:[#allocation5 + $0x10] sm:$0xff] %v99_v8  ;;  %164 = vst [vmem:[#allocation5 + $0x18] sm:$0xff] %v100_v9  ;;  %v107_v22 = vadd.f32 %v319_v1, %v36_v19  ;;  %v38_v24 = vld [vmem:[#allocation2 + $0x60] sm:$0xff]  ;;  %v39_v25 = vld [vmem:[#allocation2 + $0x68] sm:$0xff]  ;;  %v108_v26 = vadd.f32 %v319_v1, %v37_v23  ;;  %p274_p8 = por %p273_p7, %p272_p6 }
  0x14   :  { %165 = vst [vmem:[#allocation5 + $0x20] sm:$0xff] %v101_v10  ;;  %166 = vst [vmem:[#allocation5 + $0x28] sm:$0xff] %v102_v14  ;;  %v109_v27 = vadd.f32 %v319_v1, %v38_v24  ;;  %v110_v28 = vadd.f32 %v319_v1, %v39_v25  ;;  %v40_v29 = vld [vmem:[#allocation2 + $0x70] sm:$0xff]  ;;  %v41_v30 = vld [vmem:[#allocation2 + $0x78] sm:$0xff] }
  0x15   :  { %167 = vst [vmem:[#allocation5 + $0x30] sm:$0xff] %v103_v15  ;;  %168 = vst [vmem:[#allocation5 + $0x38] sm:$0xff] %v104_v16  ;;  %v42_v31 = vld [vmem:[#allocation2 + $0x80] sm:$0xff]  ;;  %v111_v32 = vadd.f32 %v319_v1, %v40_v29  ;;  %v112_v33 = vadd.f32 %v319_v1, %v41_v30  ;;  %v43_v35 = vld [vmem:[#allocation2 + $0x88] sm:$0xff]  ;;  %p275_p9 = pnand %p274_p8, %p268_p5 }
  0x16   :  { %169 = vst [vmem:[#allocation5 + $0x40] sm:$0xff] %v105_v20  ;;  %170 = vst [vmem:[#allocation5 + $0x48] sm:$0xff] %v106_v21  ;;  %v113_v34 = vadd.f32 %v319_v1, %v42_v31  ;;  %v44_v36 = vld [vmem:[#allocation2 + $0x90] sm:$0xff]  ;;  %v45_v37 = vld [vmem:[#allocation2 + $0x98] sm:$0xff]  ;;  %v114_v38 = vadd.f32 %v319_v1, %v43_v35 }
  0x17   :  { %171 = vst [vmem:[#allocation5 + $0x50] sm:$0xff] %v107_v22  ;;  %172 = vst [vmem:[#allocation5 + $0x58] sm:$0xff] %v108_v26  ;;  %v115_v39 = vadd.f32 %v319_v1, %v44_v36  ;;  %v116_v40 = vadd.f32 %v319_v1, %v45_v37  ;;  %v46_v41 = vld [vmem:[#allocation2 + $0xa0] sm:$0xff]  ;;  %v47_v42 = vld [vmem:[#allocation2 + $0xa8] sm:$0xff] }
  0x18   :  { %173 = vst [vmem:[#allocation5 + $0x60] sm:$0xff] %v109_v27  ;;  %174 = vst [vmem:[#allocation5 + $0x68] sm:$0xff] %v110_v28  ;;  %v48_v43 = vld [vmem:[#allocation2 + $0xb0] sm:$0xff]  ;;  %v117_v44 = vadd.f32 %v319_v1, %v46_v41  ;;  %v118_v45 = vadd.f32 %v319_v1, %v47_v42  ;;  %v49_v47 = vld [vmem:[#allocation2 + $0xb8] sm:$0xff] }
  0x19   :  { %175 = vst [vmem:[#allocation5 + $0x70] sm:$0xff] %v111_v32  ;;  %176 = vst [vmem:[#allocation5 + $0x78] sm:$0xff] %v112_v33  ;;  %v119_v46 = vadd.f32 %v319_v1, %v48_v43  ;;  %v50_v48 = vld [vmem:[#allocation2 + $0xc0] sm:$0xff]  ;;  %v51_v49 = vld [vmem:[#allocation2 + $0xc8] sm:$0xff]  ;;  %v120_v50 = vadd.f32 %v319_v1, %v49_v47 }
  0x1a   :  { %177 = vst [vmem:[#allocation5 + $0x80] sm:$0xff] %v113_v34  ;;  %178 = vst [vmem:[#allocation5 + $0x88] sm:$0xff] %v114_v38  ;;  %v121_v51 = vadd.f32 %v319_v1, %v50_v48  ;;  %v122_v52 = vadd.f32 %v319_v1, %v51_v49  ;;  %v52_v53 = vld [vmem:[#allocation2 + $0xd0] sm:$0xff]  ;;  %v53_v54 = vld [vmem:[#allocation2 + $0xd8] sm:$0xff] }
  0x1b   :  { %179 = vst [vmem:[#allocation5 + $0x90] sm:$0xff] %v115_v39  ;;  %180 = vst [vmem:[#allocation5 + $0x98] sm:$0xff] %v116_v40  ;;  %v54_v55 = vld [vmem:[#allocation2 + $0xe0] sm:$0xff]  ;;  %v123_v56 = vadd.f32 %v319_v1, %v52_v53  ;;  %v124_v57 = vadd.f32 %v319_v1, %v53_v54  ;;  %v55_v59 = vld [vmem:[#allocation2 + $0xe8] sm:$0xff] }
  0x1c   :  { %181 = vst [vmem:[#allocation5 + $0xa0] sm:$0xff] %v117_v44  ;;  %182 = vst [vmem:[#allocation5 + $0xa8] sm:$0xff] %v118_v45  ;;  %v125_v58 = vadd.f32 %v319_v1, %v54_v55  ;;  %v56_v60 = vld [vmem:[#allocation2 + $0xf0] sm:$0xff]  ;;  %v57_v61 = vld [vmem:[#allocation2 + $0xf8] sm:$0xff]  ;;  %v126_v62 = vadd.f32 %v319_v1, %v55_v59 }
  0x1d   :  { %183 = vst [vmem:[#allocation5 + $0xb0] sm:$0xff] %v119_v46  ;;  %184 = vst [vmem:[#allocation5 + $0xb8] sm:$0xff] %v120_v50  ;;  %v127_v63 = vadd.f32 %v319_v1, %v56_v60  ;;  %v128_v0 = vadd.f32 %v319_v1, %v57_v61  ;;  %v58_v2 = vld [vmem:[#allocation2 + $0x100] sm:$0xff]  ;;  %v59_v3 = vld [vmem:[#allocation2 + $0x108] sm:$0xff] }
  0x1e   :  { %185 = vst [vmem:[#allocation5 + $0xc0] sm:$0xff] %v121_v51  ;;  %186 = vst [vmem:[#allocation5 + $0xc8] sm:$0xff] %v122_v52  ;;  %v60_v4 = vld [vmem:[#allocation2 + $0x110] sm:$0xff]  ;;  %v129_v5 = vadd.f32 %v319_v1, %v58_v2  ;;  %v130_v6 = vadd.f32 %v319_v1, %v59_v3  ;;  %v61_v8 = vld [vmem:[#allocation2 + $0x118] sm:$0xff] }
  0x1f   :  { %187 = vst [vmem:[#allocation5 + $0xd0] sm:$0xff] %v123_v56  ;;  %188 = vst [vmem:[#allocation5 + $0xd8] sm:$0xff] %v124_v57  ;;  %v131_v7 = vadd.f32 %v319_v1, %v60_v4  ;;  %v62_v9 = vld [vmem:[#allocation2 + $0x120] sm:$0xff]  ;;  %v63_v10 = vld [vmem:[#allocation2 + $0x128] sm:$0xff]  ;;  %v132_v11 = vadd.f32 %v319_v1, %v61_v8 }
  0x20   :  { %189 = vst [vmem:[#allocation5 + $0xe0] sm:$0xff] %v125_v58  ;;  %190 = vst [vmem:[#allocation5 + $0xe8] sm:$0xff] %v126_v62  ;;  %v133_v12 = vadd.f32 %v319_v1, %v62_v9  ;;  %v134_v13 = vadd.f32 %v319_v1, %v63_v10  ;;  %v64_v14 = vld [vmem:[#allocation2 + $0x130] sm:$0xff]  ;;  %v65_v15 = vld [vmem:[#allocation2 + $0x138] sm:$0xff] }
  0x21   :  { %191 = vst [vmem:[#allocation5 + $0xf0] sm:$0xff] %v127_v63  ;;  %192 = vst [vmem:[#allocation5 + $0xf8] sm:$0xff] %v128_v0  ;;  %v66_v16 = vld [vmem:[#allocation2 + $0x140] sm:$0xff]  ;;  %v135_v17 = vadd.f32 %v319_v1, %v64_v14  ;;  %v136_v18 = vadd.f32 %v319_v1, %v65_v15  ;;  %v67_v20 = vld [vmem:[#allocation2 + $0x148] sm:$0xff] }
  0x22   :  { %193 = vst [vmem:[#allocation5 + $0x100] sm:$0xff] %v129_v5  ;;  %194 = vst [vmem:[#allocation5 + $0x108] sm:$0xff] %v130_v6  ;;  %v137_v19 = vadd.f32 %v319_v1, %v66_v16  ;;  %v68_v21 = vld [vmem:[#allocation2 + $0x150] sm:$0xff]  ;;  %v69_v22 = vld [vmem:[#allocation2 + $0x158] sm:$0xff]  ;;  %v138_v23 = vadd.f32 %v319_v1, %v67_v20 }
  0x23   :  { %195 = vst [vmem:[#allocation5 + $0x110] sm:$0xff] %v131_v7  ;;  %196 = vst [vmem:[#allocation5 + $0x118] sm:$0xff] %v132_v11  ;;  %v139_v24 = vadd.f32 %v319_v1, %v68_v21  ;;  %v140_v25 = vadd.f32 %v319_v1, %v69_v22  ;;  %v70_v26 = vld [vmem:[#allocation2 + $0x160] sm:$0xff]  ;;  %v71_v27 = vld [vmem:[#allocation2 + $0x168] sm:$0xff] }
  0x24   :  { %197 = vst [vmem:[#allocation5 + $0x120] sm:$0xff] %v133_v12  ;;  %198 = vst [vmem:[#allocation5 + $0x128] sm:$0xff] %v134_v13  ;;  %v72_v28 = vld [vmem:[#allocation2 + $0x170] sm:$0xff]  ;;  %v141_v29 = vadd.f32 %v319_v1, %v70_v26  ;;  %v142_v30 = vadd.f32 %v319_v1, %v71_v27  ;;  %v73_v32 = vld [vmem:[#allocation2 + $0x178] sm:$0xff] }
  0x25   :  { %199 = vst [vmem:[#allocation5 + $0x130] sm:$0xff] %v135_v17  ;;  %200 = vst [vmem:[#allocation5 + $0x138] sm:$0xff] %v136_v18  ;;  %v143_v31 = vadd.f32 %v319_v1, %v72_v28  ;;  %v74_v33 = vld [vmem:[#allocation2 + $0x180] sm:$0xff]  ;;  %v75_v34 = vld [vmem:[#allocation2 + $0x188] sm:$0xff]  ;;  %v144_v35 = vadd.f32 %v319_v1, %v73_v32 }
  0x26   :  { %201 = vst [vmem:[#allocation5 + $0x140] sm:$0xff] %v137_v19  ;;  %202 = vst [vmem:[#allocation5 + $0x148] sm:$0xff] %v138_v23  ;;  %v145_v36 = vadd.f32 %v319_v1, %v74_v33  ;;  %v146_v37 = vadd.f32 %v319_v1, %v75_v34  ;;  %v76_v38 = vld [vmem:[#allocation2 + $0x190] sm:$0xff]  ;;  %v77_v39 = vld [vmem:[#allocation2 + $0x198] sm:$0xff] }
  0x27   :  { %203 = vst [vmem:[#allocation5 + $0x150] sm:$0xff] %v139_v24  ;;  %204 = vst [vmem:[#allocation5 + $0x158] sm:$0xff] %v140_v25  ;;  %v78_v40 = vld [vmem:[#allocation2 + $0x1a0] sm:$0xff]  ;;  %v147_v41 = vadd.f32 %v319_v1, %v76_v38  ;;  %v148_v42 = vadd.f32 %v319_v1, %v77_v39  ;;  %v79_v44 = vld [vmem:[#allocation2 + $0x1a8] sm:$0xff] }
  0x28   :  { %205 = vst [vmem:[#allocation5 + $0x160] sm:$0xff] %v141_v29  ;;  %206 = vst [vmem:[#allocation5 + $0x168] sm:$0xff] %v142_v30  ;;  %v149_v43 = vadd.f32 %v319_v1, %v78_v40  ;;  %v80_v45 = vld [vmem:[#allocation2 + $0x1b0] sm:$0xff]  ;;  %v81_v46 = vld [vmem:[#allocation2 + $0x1b8] sm:$0xff]  ;;  %v150_v47 = vadd.f32 %v319_v1, %v79_v44 }
  0x29   :  { %207 = vst [vmem:[#allocation5 + $0x170] sm:$0xff] %v143_v31  ;;  %208 = vst [vmem:[#allocation5 + $0x178] sm:$0xff] %v144_v35  ;;  %v151_v48 = vadd.f32 %v319_v1, %v80_v45  ;;  %v152_v49 = vadd.f32 %v319_v1, %v81_v46  ;;  %v82_v50 = vld [vmem:[#allocation2 + $0x1c0] sm:$0xff]  ;;  %v83_v51 = vld [vmem:[#allocation2 + $0x1c8] sm:$0xff] }
  0x2a   :  { %209 = vst [vmem:[#allocation5 + $0x180] sm:$0xff] %v145_v36  ;;  %210 = vst [vmem:[#allocation5 + $0x188] sm:$0xff] %v146_v37  ;;  %v84_v52 = vld [vmem:[#allocation2 + $0x1d0] sm:$0xff]  ;;  %v153_v53 = vadd.f32 %v319_v1, %v82_v50  ;;  %v154_v54 = vadd.f32 %v319_v1, %v83_v51  ;;  %v85_v56 = vld [vmem:[#allocation2 + $0x1d8] sm:$0xff] }
  0x2b   :  { %211 = vst [vmem:[#allocation5 + $0x190] sm:$0xff] %v147_v41  ;;  %212 = vst [vmem:[#allocation5 + $0x198] sm:$0xff] %v148_v42  ;;  %v155_v55 = vadd.f32 %v319_v1, %v84_v52  ;;  %v86_v57 = vld [vmem:[#allocation2 + $0x1e0] sm:$0xff]  ;;  %v87_v58 = vld [vmem:[#allocation2 + $0x1e8] sm:$0xff]  ;;  %v156_v59 = vadd.f32 %v319_v1, %v85_v56 }
  0x2c   :  { %213 = vst [vmem:[#allocation5 + $0x1a0] sm:$0xff] %v149_v43  ;;  %214 = vst [vmem:[#allocation5 + $0x1a8] sm:$0xff] %v150_v47  ;;  %v157_v60 = vadd.f32 %v319_v1, %v86_v57  ;;  %v158_v61 = vadd.f32 %v319_v1, %v87_v58  ;;  %v88_v62 = vld [vmem:[#allocation2 + $0x1f0] sm:$0xff]  ;;  %v89_v63 = vld [vmem:[#allocation2 + $0x1f8] sm:$0xff] }
  0x2d   :  { %215 = vst [vmem:[#allocation5 + $0x1b0] sm:$0xff] %v151_v48  ;;  %216 = vst [vmem:[#allocation5 + $0x1b8] sm:$0xff] %v152_v49  ;;  %v159_v0 = vadd.f32 %v319_v1, %v88_v62  ;;  %v160_v2 = vadd.f32 %v319_v1, %v89_v63 }
  0x2e   :  { %217 = vst [vmem:[#allocation5 + $0x1c0] sm:$0xff] %v153_v53  ;;  %218 = vst [vmem:[#allocation5 + $0x1c8] sm:$0xff] %v154_v54 }
  0x2f   :  { %219 = vst [vmem:[#allocation5 + $0x1d0] sm:$0xff] %v155_v55  ;;  %220 = vst [vmem:[#allocation5 + $0x1d8] sm:$0xff] %v156_v59 }
  0x30   :  { %221 = vst [vmem:[#allocation5 + $0x1e0] sm:$0xff] %v157_v60  ;;  %222 = vst [vmem:[#allocation5 + $0x1e8] sm:$0xff] %v158_v61 }
  0x31   :  { %223 = vst [vmem:[#allocation5 + $0x1f0] sm:$0xff] %v159_v0  ;;  %224 = vst [vmem:[#allocation5 + $0x1f8] sm:$0xff] %v160_v2 }
  0x32   :  { %278 = shalt.err (!%p275_p9)
}
  0x33   :  { %236 = dma.vmem_to_hbm [thread:$0]  %s231_s1, 8192, %s393_s2, [#allocation4], %s292_s12, %s292_s12, %s293_s13  }
  0x34   :  { %289 = dma.done.wait [#allocation4], 8192  }
  0x35   :  { %290 = vsyncadd [#allocation4], 4294959104 }
  0x36   :  { %240 = vsyncpa [#allocation3], 1 }
  0x37   :  { %241 = vsyncpa [#allocation4], 1 }

</bundles_post_ra>
